<compile_context>
chip_gen: v7x
topology: tpu7x:2x2x1
jax: 0.10.0
libtpu: 0.0.40
codegen_flags: <defaults>
</compile_context>

<pallas_src>
import jax
import jax.numpy as jnp
from jax import lax
from jax.experimental import pallas as pl
from jax.experimental.pallas import tpu as pltpu


def _round_up(x, m):
    return ((x + m - 1) // m) * m


def _pick_tile_b(B, max_tile_b):
    """Rows per grid step.

    * Small / oddly-sized batches: one full-batch tile (block shape equal to
      the array shape is always legal, and tiny batches don't benefit from
      tiling).
    * Large batches: multiple-of-128 tiles (clean bf16 sublane packing and a
      lane-dense (1, tile_b) output), at least two grid steps so the
      "parallel" axis can shard across v7x's two TensorCores, capped at
      max_tile_b and never larger than B (last-block start stays in bounds;
      the ragged tail is handled by the pipeline + output slicing).
    """
    if B <= 512 or B % 8 != 0:
        tile = B
    else:
        tile = max(128, min(_round_up(pl.cdiv(B, 2), 128), (B // 128) * 128))
    if tile > max_tile_b:                       # explicit cap (VMEM / tests)
        tile = max(8, (min(max_tile_b, B) // 8) * 8)
    return tile


def neumf_mlp_kernel(ue_ref, ie_ref, w1u_ref, w1i_ref, b1_ref,
                     w2_ref, b2_ref, w3_ref, b3_ref, o_ref):
    """relu(ue@W1u + ie@W1i + b1) -> relu(. @ W2 + b2) -> . @ W3 + b3."""
    # Layer 1: concat([ue, ie]) @ W1 fused as two matmuls (W1 split by rows).
    h1 = (jnp.dot(ue_ref[...], w1u_ref[...], preferred_element_type=jnp.float32)
          + jnp.dot(ie_ref[...], w1i_ref[...], preferred_element_type=jnp.float32)
          + b1_ref[...])
    h1 = jnp.maximum(h1, 0.0).astype(jnp.bfloat16)            # (TILE_B, H1)
    # Layer 2.
    h2 = jnp.dot(h1, w2_ref[...], preferred_element_type=jnp.float32) + b2_ref[...]
    h2 = jnp.maximum(h2, 0.0).astype(jnp.bfloat16)            # (TILE_B, H2)
    # Layer 3 as (1, H2) @ (TILE_B, H2)^T -> (1, TILE_B): lane-dense output,
    # no N=1-wide masked stores.
    o = lax.dot_general(w3_ref[...], h2,
                        dimension_numbers=(((1,), (1,)), ((), ())),
                        preferred_element_type=jnp.float32)   # (1, TILE_B)
    o_ref[...] = (o + b3_ref[...])[None]                      # (1, 1, TILE_B)


def neumf_mlp(ue, ie, w1u, w1i, b1, w2, b2, w3_row, b3, *, max_tile_b=8192):
    """Fused 3-layer MLP head. ue/ie: (B, u_dim)/(B, i_dim) bf16. Returns (B,) f32."""
    B, u_dim = ue.shape
    _, i_dim = ie.shape
    h1_dim = w1u.shape[1]
    h2_dim = w2.shape[1]

    tile_b = _pick_tile_b(B, max_tile_b)
    num_tiles = pl.cdiv(B, tile_b)   # ragged last block handled by the pipeline

    nbytes = lambda a: a.size * a.dtype.itemsize
    cost = pl.CostEstimate(
        flops=2 * B * (u_dim * h1_dim + i_dim * h1_dim + h1_dim * h2_dim + h2_dim),
        transcendentals=0,
        bytes_accessed=(nbytes(ue) + nbytes(ie) + nbytes(w1u) + nbytes(w1i)
                        + nbytes(b1) + nbytes(w2) + nbytes(b2) + nbytes(w3_row)
                        + nbytes(b3) + num_tiles * tile_b * 4),
    )

    # Constant index_map -> weights/biases DMA'd once and stay VMEM-resident.
    const = lambda shape: pl.BlockSpec(shape, lambda t: (0,) * len(shape))

    out = pl.pallas_call(
        neumf_mlp_kernel,
        out_shape=jax.ShapeDtypeStruct((num_tiles, 1, tile_b), jnp.float32),
        grid=(num_tiles,),
        in_specs=[
            pl.BlockSpec((tile_b, u_dim), lambda t: (t, 0)),   # streamed activations
            pl.BlockSpec((tile_b, i_dim), lambda t: (t, 0)),
            const(w1u.shape), const(w1i.shape), const(b1.shape),
            const(w2.shape), const(b2.shape),
            const(w3_row.shape), const(b3.shape),
        ],
        out_specs=pl.BlockSpec((1, 1, tile_b), lambda t: (t, 0, 0)),
        compiler_params=pltpu.CompilerParams(
            dimension_semantics=("parallel",),                 # megacore on v7x
            vmem_limit_bytes=32 * 1024 * 1024),
        cost_estimate=cost,
    )(ue, ie, w1u, w1i, b1, w2, b2, w3_row, b3)
    # Garbage rows of the ragged tail (if any) are dropped here.
    return out.reshape(num_tiles * tile_b)[:B]


class NeuMFHeadPallas:
    """JAX/Pallas port of NeuMFHead (frozen u/i embeddings + 3-layer MLP head)."""

    def __init__(self, u_emb, i_bert, mlp_dims=(128, 64), key=None):
        self.u_mat = jnp.asarray(u_emb, jnp.float32)   # (num_users, u_dim), frozen
        self.i_mat = jnp.asarray(i_bert, jnp.float32)  # (num_items, i_dim), frozen
        # Frozen tables pre-cast to bf16 once: halves the gather's HBM read and
        # removes the per-call astype copy.
        self._u_bf16 = self.u_mat.astype(jnp.bfloat16)
        self._i_bf16 = self.i_mat.astype(jnp.bfloat16)

        u_dim = self.u_mat.shape[1]
        i_dim = self.i_mat.shape[1]
        d_in = u_dim + i_dim

        if key is None:
            key = jax.random.PRNGKey(0)
        k1, k2, k3, k4, k5, k6 = jax.random.split(key, 6)

        def linear_init(kw, kb, fan_in, fan_out):
            # uniform(-1/sqrt(fan_in), 1/sqrt(fan_in)), like torch nn.Linear
            bound = 1.0 / float(fan_in) ** 0.5
            w = jax.random.uniform(kw, (fan_in, fan_out), jnp.float32, -bound, bound)
            b = jax.random.uniform(kb, (1, fan_out), jnp.float32, -bound, bound)
            return w, b

        # f32 master parameters (reference semantics; weights stored [in, out]).
        self.w1, self.b1 = linear_init(k1, k2, d_in, mlp_dims[0])
        self.w2, self.b2 = linear_init(k3, k4, mlp_dims[0], mlp_dims[1])
        self.w3, self.b3 = linear_init(k5, k6, mlp_dims[1], 1)

        # Kernel-side copies: W1 split so the concat fuses away, matmul weights
        # bf16 (f32 biases), W3 stored as a (1, H2) row for the lane-dense layer.
        self._w1u = self.w1[:u_dim].astype(jnp.bfloat16)       # (u_dim, H1)
        self._w1i = self.w1[u_dim:].astype(jnp.bfloat16)       # (i_dim, H1)
        self._w2 = self.w2.astype(jnp.bfloat16)                # (H1, H2)
        self._w3r = self.w3.T.astype(jnp.bfloat16)             # (1, H2)

    def __call__(self, u, i):
        ue = self._u_bf16[u]                                   # (B, u_dim) bf16 gather
        ie = self._i_bf16[i]                                   # (B, i_dim) bf16 gather
        return neumf_mlp(ue, ie, self._w1u, self._w1i, self.b1,
                         self._w2, self.b2, self._w3r, self.b3)


def _reference(model, u, i):
    """Pure-JAX f32 reference matching the PyTorch module."""
    x = jnp.concatenate([model.u_mat[u], model.i_mat[i]], axis=-1)
    h1 = jnp.maximum(x @ model.w1 + model.b1, 0.0)
    h2 = jnp.maximum(h1 @ model.w2 + model.b2, 0.0)
    return (h2 @ model.w3 + model.b3).squeeze(-1)


if __name__ == "__main__":
    key = jax.random.PRNGKey(0)
    k_u, k_i, k_params, k_idx_u, k_idx_i = jax.random.split(key, 5)

    num_users, u_dim = 16, 64
    num_items, i_dim = 16, 64
    batch = 8

    u_emb = jax.random.normal(k_u, (num_users, u_dim), jnp.float32)
    i_bert = jax.random.normal(k_i, (num_items, i_dim), jnp.float32)

    model = NeuMFHeadPallas(u_emb, i_bert, mlp_dims=(128, 64), key=k_params)

    u_idx = jax.random.randint(k_idx_u, (batch,), 0, num_users)
    i_idx = jax.random.randint(k_idx_i, (batch,), 0, num_items)

    out = jax.block_until_ready(model(u_idx, i_idx))
    ref = _reference(model, u_idx, i_idx)
    assert out.shape == (batch,), out.shape
    # bf16 matmul inputs / bf16 embedding gather with f32 accumulation -> loose
    # tolerance vs the f32 reference.
    assert jnp.allclose(out, ref, atol=5e-2, rtol=5e-2), (out, ref)

    # Second check: multi-tile grid + ragged last block (no padding copies).
    batch2 = 40
    k_idx_u2, k_idx_i2 = jax.random.split(jax.random.PRNGKey(1), 2)
    u_idx2 = jax.random.randint(k_idx_u2, (batch2,), 0, num_users)
    i_idx2 = jax.random.randint(k_idx_i2, (batch2,), 0, num_items)
    ue2 = model._u_bf16[u_idx2]
    ie2 = model._i_bf16[i_idx2]
    out2 = jax.block_until_ready(
        neumf_mlp(ue2, ie2, model._w1u, model._w1i, model.b1,
                  model._w2, model.b2, model._w3r, model.b3, max_tile_b=16))
    ref2 = _reference(model, u_idx2, i_idx2)
    assert out2.shape == (batch2,), out2.shape
    assert jnp.allclose(out2, ref2, atol=5e-2, rtol=5e-2), (out2, ref2)

    print("KERNEL_OK")
</pallas_src>

<mosaic_0001>
module attributes {stable_mosaic.version = 11 : i64} {
  func.func @neumf_mlp_kernel(%arg0: i32, %arg1: memref<8x64xbf16, #tpu.memory_space<vmem>>, %arg2: memref<8x64xbf16, #tpu.memory_space<vmem>>, %arg3: memref<64x128xbf16, #tpu.memory_space<vmem>>, %arg4: memref<64x128xbf16, #tpu.memory_space<vmem>>, %arg5: memref<1x128xf32, #tpu.memory_space<vmem>>, %arg6: memref<128x64xbf16, #tpu.memory_space<vmem>>, %arg7: memref<1x64xf32, #tpu.memory_space<vmem>>, %arg8: memref<1x64xbf16, #tpu.memory_space<vmem>>, %arg9: memref<1x1xf32, #tpu.memory_space<vmem>>, %arg10: memref<1x1x8xf32, #tpu.memory_space<vmem>>) attributes {dimension_semantics = [#tpu.dimension_semantics<parallel>], iteration_bounds = array<i64: 1>, scalar_prefetch = 0 : i64, scratch_operands = 0 : i64, tpu.core_type = #tpu.core_type<tc>, window_params = [{transform_indices = @transform_0, window_bounds = array<i64: 8, 64>}, {transform_indices = @transform_1, window_bounds = array<i64: 8, 64>}, {pipeline_mode = #tpu.pipeline_mode<synchronous>, transform_indices = @transform_2, window_bounds = array<i64: 64, 128>}, {pipeline_mode = #tpu.pipeline_mode<synchronous>, transform_indices = @transform_3, window_bounds = array<i64: 64, 128>}, {pipeline_mode = #tpu.pipeline_mode<synchronous>, transform_indices = @transform_4, window_bounds = array<i64: 1, 128>}, {pipeline_mode = #tpu.pipeline_mode<synchronous>, transform_indices = @transform_5, window_bounds = array<i64: 128, 64>}, {pipeline_mode = #tpu.pipeline_mode<synchronous>, transform_indices = @transform_6, window_bounds = array<i64: 1, 64>}, {pipeline_mode = #tpu.pipeline_mode<synchronous>, transform_indices = @transform_7, window_bounds = array<i64: 1, 64>}, {pipeline_mode = #tpu.pipeline_mode<synchronous>, transform_indices = @transform_8, window_bounds = array<i64: 1, 1>}, {transform_indices = @transform_9, window_bounds = array<i64: 1, 1, 8>}]} {
    %c0 = arith.constant 0 : index
    %c0_0 = arith.constant 0 : index
    %0 = vector.load %arg1[%c0, %c0_0] : memref<8x64xbf16, #tpu.memory_space<vmem>>, vector<8x64xbf16>
    %c0_1 = arith.constant 0 : index
    %c0_2 = arith.constant 0 : index
    %1 = vector.load %arg3[%c0_1, %c0_2] : memref<64x128xbf16, #tpu.memory_space<vmem>>, vector<64x128xbf16>
    %cst = arith.constant dense<0.000000e+00> : vector<8x128xf32>
    %2 = tpu.matmul %0, %1, %cst {dimension_numbers = #tpu.dot_dimension_numbers<[1], [0], [0], [1], [0, 0, 1, 1], [], []>} : vector<8x64xbf16>, vector<64x128xbf16>, vector<8x128xf32> -> vector<8x128xf32>
    %c0_3 = arith.constant 0 : index
    %c0_4 = arith.constant 0 : index
    %3 = vector.load %arg2[%c0_3, %c0_4] : memref<8x64xbf16, #tpu.memory_space<vmem>>, vector<8x64xbf16>
    %c0_5 = arith.constant 0 : index
    %c0_6 = arith.constant 0 : index
    %4 = vector.load %arg4[%c0_5, %c0_6] : memref<64x128xbf16, #tpu.memory_space<vmem>>, vector<64x128xbf16>
    %cst_7 = arith.constant dense<0.000000e+00> : vector<8x128xf32>
    %5 = tpu.matmul %3, %4, %cst_7 {dimension_numbers = #tpu.dot_dimension_numbers<[1], [0], [0], [1], [0, 0, 1, 1], [], []>} : vector<8x64xbf16>, vector<64x128xbf16>, vector<8x128xf32> -> vector<8x128xf32>
    %6 = arith.addf %2, %5 : vector<8x128xf32>
    %c0_8 = arith.constant 0 : index
    %c0_9 = arith.constant 0 : index
    %7 = vector.load %arg5[%c0_8, %c0_9] : memref<1x128xf32, #tpu.memory_space<vmem>>, vector<1x128xf32>
    %8 = vector.broadcast %7 : vector<1x128xf32> to vector<8x128xf32>
    %9 = arith.addf %6, %8 : vector<8x128xf32>
    %cst_10 = arith.constant 0.000000e+00 : f32
    %10 = vector.broadcast %cst_10 : f32 to vector<8x128xf32>
    %11 = arith.maximumf %9, %10 : vector<8x128xf32>
    %12 = arith.truncf %11 : vector<8x128xf32> to vector<8x128xbf16>
    %c0_11 = arith.constant 0 : index
    %c0_12 = arith.constant 0 : index
    %13 = vector.load %arg6[%c0_11, %c0_12] : memref<128x64xbf16, #tpu.memory_space<vmem>>, vector<128x64xbf16>
    %cst_13 = arith.constant dense<0.000000e+00> : vector<8x64xf32>
    %14 = tpu.matmul %12, %13, %cst_13 {dimension_numbers = #tpu.dot_dimension_numbers<[1], [0], [0], [1], [0, 0, 1, 1], [], []>} : vector<8x128xbf16>, vector<128x64xbf16>, vector<8x64xf32> -> vector<8x64xf32>
    %c0_14 = arith.constant 0 : index
    %c0_15 = arith.constant 0 : index
    %15 = vector.load %arg7[%c0_14, %c0_15] : memref<1x64xf32, #tpu.memory_space<vmem>>, vector<1x64xf32>
    %16 = vector.broadcast %15 : vector<1x64xf32> to vector<8x64xf32>
    %17 = arith.addf %14, %16 : vector<8x64xf32>
    %cst_16 = arith.constant 0.000000e+00 : f32
    %18 = vector.broadcast %cst_16 : f32 to vector<8x64xf32>
    %19 = arith.maximumf %17, %18 : vector<8x64xf32>
    %20 = arith.truncf %19 : vector<8x64xf32> to vector<8x64xbf16>
    %c0_17 = arith.constant 0 : index
    %c0_18 = arith.constant 0 : index
    %21 = vector.load %arg8[%c0_17, %c0_18] : memref<1x64xbf16, #tpu.memory_space<vmem>>, vector<1x64xbf16>
    %cst_19 = arith.constant dense<0.000000e+00> : vector<1x8xf32>
    %22 = tpu.matmul %21, %20, %cst_19 {dimension_numbers = #tpu.dot_dimension_numbers<[1], [1], [0], [0], [0, 0, 1, 0], [], []>} : vector<1x64xbf16>, vector<8x64xbf16>, vector<1x8xf32> -> vector<1x8xf32>
    %c0_20 = arith.constant 0 : index
    %c0_21 = arith.constant 0 : index
    %23 = vector.load %arg9[%c0_20, %c0_21] : memref<1x1xf32, #tpu.memory_space<vmem>>, vector<1x1xf32>
    %24 = vector.broadcast %23 : vector<1x1xf32> to vector<1x8xf32>
    %25 = arith.addf %22, %24 : vector<1x8xf32>
    %26 = vector.shape_cast %25 : vector<1x8xf32> to vector<1x1x8xf32>
    %c0_22 = arith.constant 0 : index
    %c0_23 = arith.constant 0 : index
    %c0_24 = arith.constant 0 : index
    %27 = vector.load %arg10[%c0_22, %c0_23, %c0_24] : memref<1x1x8xf32, #tpu.memory_space<vmem>>, vector<1x1x8xf32>
    tpu.vector_store %arg10[%c0_22, %c0_23, %c0_24], %26 {strides = array<i32>} : memref<1x1x8xf32, #tpu.memory_space<vmem>>, vector<1x1x8xf32>,
    return
  }
  func.func @transform_0(%arg0: i32) -> (i32, i32) {
    %c0_i32 = arith.constant 0 : i32
    %c0_i32_0 = arith.constant 0 : i32
    return %arg0, %c0_i32 : i32, i32
  }
  func.func @transform_1(%arg0: i32) -> (i32, i32) {
    %c0_i32 = arith.constant 0 : i32
    %c0_i32_0 = arith.constant 0 : i32
    return %arg0, %c0_i32 : i32, i32
  }
  func.func @transform_2(%arg0: i32) -> (i32, i32) {
    %c0_i32 = arith.constant 0 : i32
    %c0_i32_0 = arith.constant 0 : i32
    %c0_i32_1 = arith.constant 0 : i32
    return %c0_i32, %c0_i32_0 : i32, i32
  }
  func.func @transform_3(%arg0: i32) -> (i32, i32) {
    %c0_i32 = arith.constant 0 : i32
    %c0_i32_0 = arith.constant 0 : i32
    %c0_i32_1 = arith.constant 0 : i32
    return %c0_i32, %c0_i32_0 : i32, i32
  }
  func.func @transform_4(%arg0: i32) -> (i32, i32) {
    %c0_i32 = arith.constant 0 : i32
    %c0_i32_0 = arith.constant 0 : i32
    %c0_i32_1 = arith.constant 0 : i32
    return %c0_i32, %c0_i32_0 : i32, i32
  }
  func.func @transform_5(%arg0: i32) -> (i32, i32) {
    %c0_i32 = arith.constant 0 : i32
    %c0_i32_0 = arith.constant 0 : i32
    %c0_i32_1 = arith.constant 0 : i32
    return %c0_i32, %c0_i32_0 : i32, i32
  }
  func.func @transform_6(%arg0: i32) -> (i32, i32) {
    %c0_i32 = arith.constant 0 : i32
    %c0_i32_0 = arith.constant 0 : i32
    %c0_i32_1 = arith.constant 0 : i32
    return %c0_i32, %c0_i32_0 : i32, i32
  }
  func.func @transform_7(%arg0: i32) -> (i32, i32) {
    %c0_i32 = arith.constant 0 : i32
    %c0_i32_0 = arith.constant 0 : i32
    %c0_i32_1 = arith.constant 0 : i32
    return %c0_i32, %c0_i32_0 : i32, i32
  }
  func.func @transform_8(%arg0: i32) -> (i32, i32) {
    %c0_i32 = arith.constant 0 : i32
    %c0_i32_0 = arith.constant 0 : i32
    %c0_i32_1 = arith.constant 0 : i32
    return %c0_i32, %c0_i32_0 : i32, i32
  }
  func.func @transform_9(%arg0: i32) -> (i32, i32, i32) {
    %c0_i32 = arith.constant 0 : i32
    %c0_i32_0 = arith.constant 0 : i32
    %c0_i32_1 = arith.constant 0 : i32
    return %arg0, %c0_i32, %c0_i32_0 : i32, i32, i32
  }
}

</mosaic_0001>

<bundles_post_ra>
// kernel: tpu_custom_call.1
= control target key start
LH: loop header
LB: loop body
LE: loop exit
PB: predicated region body
PF: predicated region fallthrough
CT: control target
= control target key end

     0   :  { %s662_s0 = inlined_call_operand.vmem [shape: bf16[8,64], index: 0, kind: input, shape index: {}]   ;;  %s663_s1 = inlined_call_operand.vmem [shape: bf16[8,64], index: 1, kind: input, shape index: {}]   ;;  %s664_s2 = inlined_call_operand.vmem [shape: bf16[64,128], index: 2, kind: input, shape index: {}]   ;;  %s665_s3 = inlined_call_operand.vmem [shape: bf16[64,128], index: 3, kind: input, shape index: {}]   ;;  %s666_s4 = inlined_call_operand.vmem [shape: f32[1,128], index: 4, kind: input, shape index: {}]   ;;  %s667_s5 = inlined_call_operand.vmem [shape: bf16[128,64], index: 5, kind: input, shape index: {}]   ;;  %s668_s6 = inlined_call_operand.vmem [shape: f32[1,64], index: 6, kind: input, shape index: {}]   ;;  %s669_s7 = inlined_call_operand.vmem [shape: bf16[1,64], index: 7, kind: input, shape index: {}]   ;;  %s670_s8 = inlined_call_operand.<no memory space> [shape: f32[1,1], index: 8, kind: input, shape index: {}]   ;;  %s671_s9 = inlined_call_operand.hbm [shape: f32[1,1,8], index: 9, kind: output, shape index: {}]  }
   0x1   :  { %v14_v0 = vstv %s670_s8 }
   0x2   :  { %15 = vst [vmem:[#allocation2] sm:$0x1] %v14_v0 }
   0x3   :  { %v482_v1 = vld [vmem:[%s665_s3] sm:$0xff]   ;;  %v522_v2 = vmov 0.0   ;;  %v483_v3 = vld [vmem:[%s665_s3 + $0x8] sm:$0xff]   ;;  %vm523_vm0 = vmmov 0   ;;  %v484_v4 = vld [vmem:[%s665_s3 + $0x10] sm:$0xff]   ;;  %vm78_vm1 = vcmask 523264  }
   0x4   :  { %427 = vmatprep.subr.bf16.mxu1 %v522_v2  ;;  %451 = vmatprep.subr.bf16.mxu0 %v522_v2  ;;  %v485_v5 = vld [vmem:[%s665_s3 + $0x18] sm:$0xff]   ;;  %v490_v6 = vld [vmem:[%s667_s5] sm:$0xff]   ;;  %v491_v7 = vld [vmem:[%s667_s5 + $0x8] sm:$0xff]  }
   0x5   :  { %428 = vmatpush3.bf16.msra.mxu1 %v482_v1  ;;  %435 = vmatprep.mubr.msk.bf16.mxu1 %vm523_vm0, %v522_v2  ;;  %v45_v8 = vld [vmem:[%s663_s1] sm:$0xf] }
   0x6   :  { %429 = vmatprep.subr.bf16.mxu1 %v522_v2  ;;  %467 = vmatprep.mubr.msk.bf16.mxu0 %vm523_vm0, %v522_v2  ;;  %v486_v9 = vld [vmem:[%s664_s2] sm:$0xff]  }
   0x7   :  { %452 = vmatpush3.bf16.msra.mxu0 %v490_v6 }
   0x8   :  { %453 = vmatprep.subr.bf16.mxu0 %v522_v2 }
   0x9   :  { %430 = vmatpush3.bf16.msra.mxu1 %v483_v3 }
   0xa   :  { %431 = vmatprep.subr.bf16.mxu1 %v522_v2 }
   0xd   :  { %432 = vmatpush3.bf16.msra.mxu1 %v484_v4 }
   0xe   :  { %433 = vmatprep.subr.bf16.mxu1 %v522_v2 }
  0x11   :  { %434 = vmatpush3.bf16.msra.mxu1 %v485_v5 }
  0x12   :  { %16 = vsyncpa [#allocation4], 0  ;;  %439 = vmatprep.subr.bf16.mxu1 %v522_v2  ;;  %454 = vmatpush3.bf16.msra.mxu0 %v491_v7  ;;  %v487_v10 = vld [vmem:[%s664_s2 + $0x8] sm:$0xff]   ;;  %v488_v11 = vld [vmem:[%s664_s2 + $0x10] sm:$0xff]   ;;  %v524_v34 = vmov 0   ;;  %v319_v45 = vlaneseq  ;;  %vm369_vm2 = vcmask 57344  }
  0x13   :  { %455 = vmatprep.subr.bf16.mxu0 %v522_v2  ;;  %v489_v12 = vld [vmem:[%s664_s2 + $0x18] sm:$0xff]   ;;  %v36_v13 = vld [vmem:[%s662_s0] sm:$0xf]  ;;  %v492_v14 = vld [vmem:[%s667_s5 + $0x10] sm:$0xff]   ;;  %481 = vset.pattern.permute.xlu0 %v524_v34 }
  0x14   :  { %436 = vmatmul.mubr.msk.bf16.vlgmr.msra.gmra.mrb[0].mxu1 %vm78_vm1, %v45_v8  ;;  %v493_v15 = vld [vmem:[%s667_s5 + $0x18] sm:$0xff]   ;;  %v494_v16 = vld [vmem:[%s667_s5 + $0x20] sm:$0xff]   ;;  %v495_v17 = vld [vmem:[%s667_s5 + $0x28] sm:$0xff]   ;;  %v320_v46 = vshrl.u32 %v319_v45, 7 }
  0x15   :  { %440 = vmatpush3.bf16.msra.mxu1 %v486_v9  ;;  %447 = vmatprep.mubr.msk.bf16.mxu1 %vm523_vm0, %v522_v2  ;;  %v496_v18 = vld [vmem:[%s667_s5 + $0x30] sm:$0xff]   ;;  %v497_v19 = vld [vmem:[%s667_s5 + $0x38] sm:$0xff]   ;;  %v395_v25 = vld [vmem:[%s666_s4] ss:$0 sm:$0xff] }
  0x16   :  { %441 = vmatprep.subr.bf16.mxu1 %v522_v2  ;;  %456 = vmatpush3.bf16.msra.mxu0 %v492_v14  ;;  %v313_v33 = vld [vmem:[#allocation2] sm:$0x1]  ;;  %v321_v47 = vsub.s32 0, %v320_v46 }
  0x17   :  { %457 = vmatprep.subr.bf16.mxu0 %v522_v2  ;;  %316 = vperm.xlu0 %481, %v313_v33   ;;  %v396_v35 = vld [vmem:[%s668_s6] ss:$0 sm:$0xff]  ;;  %s525_s6 = smov [#allocation3]  }
  0x18   :  { %v312_v44 = vld [vmem:[%s669_s7] sm:$0x1]  ;;  %s377_s24 = sshll.u32 %s525_s6, 4  ;;  %s378_s24 = int_to_ptr.vmem [resolvable:$true] %s377_s24 }
  0x19   :  { %442 = vmatpush3.bf16.msra.mxu1 %v487_v10  ;;  %s498_s25 = scalar_lea.vmem %s378_s24, 16  ;;  %s502_s7 = scalar_lea.vmem %s378_s24, 32 }
  0x1a   :  { %443 = vmatprep.subr.bf16.mxu1 %v522_v2  ;;  %458 = vmatpush3.bf16.msra.mxu0 %v493_v15  ;;  %p499_p0 = scmp.ne.s32.totalorder %s378_s24, %s498_s25  ;;  %p503_p1 = scmp.lt.s32.totalorder %s378_s24, %s378_s24 }
  0x1b   :  { %459 = vmatprep.subr.bf16.mxu0 %v522_v2  ;;  %p504_p2 = scmp.lt.s32.totalorder %s502_s7, %s498_s25 }
  0x1d   :  { %444 = vmatpush3.bf16.msra.mxu1 %v488_v11  ;;  %p505_p3 = por %p504_p2, %p503_p1 }
  0x1e   :  { %445 = vmatprep.subr.bf16.mxu1 %v522_v2  ;;  %460 = vmatpush3.bf16.msra.mxu0 %v494_v16 }
  0x1f   :  { %461 = vmatprep.subr.bf16.mxu0 %v522_v2  ;;  %p506_p4 = pnand %p505_p3, %p499_p0 }
  0x21   :  { %446 = vmatpush3.bf16.msra.mxu1 %v489_v12 }
  0x22   :  { %471 = vmatprep.subr.bf16.mxu1 %v522_v2  ;;  %462 = vmatpush3.bf16.msra.mxu0 %v495_v17 }
  0x23   :  { %463 = vmatprep.subr.bf16.mxu0 %v522_v2 }
  0x24   :  { %448 = vmatmul.mubr.msk.bf16.vlgmr.msra.gmra.mrb[4].mxu1 %vm78_vm1, %v36_v13 }
  0x25   :  { %473 = vmatprep.mubr.msk.bf16.mxu1 %vm523_vm0, %v522_v2 }
  0x26   :  { %464 = vmatpush3.bf16.msra.mxu0 %v496_v18 }
  0x27   :  { %465 = vmatprep.subr.bf16.mxu0 %v522_v2 }
  0x2a   :  { %466 = vmatpush3.bf16.msra.mxu0 %v497_v19 }
  0x96   :  { %v317_v48 = vpop.permute.xlu0 %316 }
  0x97   :  { %v322_v49 = vrot.slane %v317_v48, %v321_v47 }
  0xe7   :  { %v116_v20 = vpop.f32.mrb[0].mxu1 }
  0xe8   :  { %v437_v21 = vpop.f32.mrb[1].mxu1 }
  0xe9   :  { %v119_v22 = vpop.f32.mrb[2].mxu1 }
  0xea   :  { %v438_v23 = vpop.f32.mrb[3].mxu1 }
  0xf7   :  { %v183_v24 = vpop.f32.mrb[4].mxu1 }
  0xf8   :  { %v184_v26 = vadd.f32 %v183_v24, %v116_v20  ;;  %v449_v27 = vpop.f32.mrb[5].mxu1 }
  0xf9   :  { %v186_v28 = vpop.f32.mrb[6].mxu1 }
  0xfa   :  { %v196_v29 = vadd.f32 %v395_v25, %v184_v26  ;;  %v450_v30 = vpop.f32.mrb[7].mxu1 }
  0xfc   :  { %v197_v31 = vmax.f32 %v196_v29, 0.0 }
  0xfe   :  { %v198_v32 = vpack.c.bf16 %v197_v31, %v197_v31 }
 0x100   :  { %468 = vmatmul.mubr.bf16.vlgmr.msra.gmra.mrb[0].mxu0 %v198_v32 }
 0x1d3   :  { %v304_v36 = vpop.f32.mrb[0].mxu0 }
 0x1d4   :  { %v305_v37 = vadd.f32 %v396_v35, %v304_v36  ;;  %v469_v38 = vpop.f32.mrb[1].mxu0 }
 0x1d5   :  { %v307_v39 = vpop.f32.mrb[2].mxu0 }
 0x1d6   :  { %v310_v40 = vmax.f32 %v305_v37, 0.0  ;;  %v470_v41 = vpop.f32.mrb[3].mxu0 }
 0x1d8   :  { %v311_v42 = vpack.c.bf16 %v310_v40, %v310_v40 }
 0x1da   :  { %v327_v43 = vsel %vm78_vm1, %v311_v42, 0 }
 0x1db   :  { %472 = vmatpush3.bf16.xpose.msra.mxu1 %v327_v43 }
 0x1e2   :  { %474 = vmatmul.mubr.msk.bf16.vlgmr.msra.gmra.mrb[8].mxu1 %vm78_vm1, %v312_v44 }
 0x2b5   :  { %v363_v50 = vpop.f32.mrb[8].mxu1 }
 0x2b6   :  { %v364_v51 = vadd.f32 %v363_v50, %v322_v49  ;;  %v475_v52 = vpop.f32.mrb[9].mxu1 }
 0x2b7   :  { %v366_v53 = vpop.f32.mrb[10].mxu1 }
 0x2b8   :  { %v476_v54 = vpop.f32.mrb[11].mxu1  ;;  %370 = vst.msk [vmem:[#allocation3] sm:$0x1] %vm369_vm2, %v364_v51 }
 0x2b9   :  { %509 = shalt.err (!%p506_p4)
}
 0x2ba   :  { %s510_s1 = scalar_lea.hbm %s671_s9, 16 }
 0x2bb   :  { %p511_p5 = scmp.ne.s32.totalorder %s671_s9, %s510_s1  ;;  %p514_p6 = scmp.lt.u32.totalorder %s510_s1, %s671_s9 }
 0x2bd   :  { %p516_p7 = pnand %p514_p6, %p511_p5 }
 0x2bf   :  { %519 = shalt.err (!%p516_p7)
}
 0x2c0   :  { %380 = dma.vmem_to_hbm [thread:$0]  %s378_s24, 16, %s671_s9, [#allocation4]  }
 0x2c1   :  { %520 = dma.done.wait [#allocation4], 16  }
 0x2c2   :  { %521 = vsyncadd [#allocation4], 4294967280 }
 0x2c3   :  { %384 = vsyncpa [#allocation4], 1 }

</bundles_post_ra>
